<compile_context>
chip_gen: v5e
topology: v5e:2x2
jax: 0.10.0
libtpu: 0.0.40
codegen_flags: <defaults>
</compile_context>

<pallas_src>
import jax
import jax.numpy as jnp
from jax.experimental import pallas as pl
from jax.experimental.pallas import tpu as pltpu


# ---------------------------------------------------------------------------
# Kernel
# ---------------------------------------------------------------------------
def _fusion_head_kernel(img_ref, txt_ref,
                        wV_ref, bV_ref, wT_ref, bT_ref,
                        predV_ref, predT_ref):
    # ReLU in f32 (portable across v5e/v6e/v7x VPUs), cast back to bf16 for the MXU.
    img = jnp.maximum(img_ref[...].astype(jnp.float32), 0.0).astype(jnp.bfloat16)
    txt = jnp.maximum(txt_ref[...].astype(jnp.float32), 0.0).astype(jnp.bfloat16)

    # One fused Linear per branch: classV(dropout(fcV(x))) == x @ W'V + b'V (eval mode).
    lv = jnp.dot(img, wV_ref[...], preferred_element_type=jnp.float32) + bV_ref[...]
    lt = jnp.dot(txt, wT_ref[...], preferred_element_type=jnp.float32) + bT_ref[...]

    # Softmax over the (padded) class axis. Padded columns carry bias -1e30, so their
    # exp underflows to exactly 0 and the real-class softmax is unchanged.
    lv = lv - jnp.max(lv, axis=-1, keepdims=True)
    lt = lt - jnp.max(lt, axis=-1, keepdims=True)
    ev = jnp.exp(lv)
    et = jnp.exp(lt)
    # Exact normalization: the kernel is DMA-bound, so the divide is free slack and
    # keeps downstream losses/metrics exactly normalized.
    pv = ev / jnp.sum(ev, axis=-1, keepdims=True)
    pt = et / jnp.sum(et, axis=-1, keepdims=True)

    predV_ref[...] = pv.astype(predV_ref.dtype)   # (TB, 128) lane-dense bf16 store
    predT_ref[...] = pt.astype(predT_ref.dtype)   # (TB, 128) lane-dense bf16 store


# ---------------------------------------------------------------------------
# Wrapper
# ---------------------------------------------------------------------------
def _round_up(x, m):
    return ((x + m - 1) // m) * m


def _choose_batch_tile(B, batch_tile):
    """Pick a batch tile: big (amortize ~0.35 us/step), sublane aligned, and leaving
    >= 2 grid steps for large batches so v7x's two TensorCores both get work."""
    TB = min(batch_tile, B)
    if B > 256:
        half = _round_up(-(-B // 2), 8)        # ceil(B/2), rounded up to sublanes
        TB = min(TB, half)
    if TB != B:
        TB = max(8, (TB // 8) * 8)             # (8,128) rule: multiple of 8 or full dim
    return TB


def _vmem_budget_bytes(TB, DV, H, CP):
    """Double-buffered working set + headroom; used for vmem_limit_bytes."""
    acts = 2 * TB * (DV + H) * 2               # bf16 input tiles, double-buffered
    outs = 2 * 2 * TB * CP * 2                 # two bf16 output tiles, double-buffered
    wts = 2 * ((DV + H) * CP * 2 + 2 * CP * 4)  # bf16 weights + f32 biases, double-buffered
    return acts + outs + wts + (16 << 20)      # + 16 MiB compiler/scratch headroom


def fusion_head(image_features, pooled_output, fused, *, batch_tile=1024):
    """image_features: (B, 1000); pooled_output: (B, S, H).  bf16 inputs preferred
    (halves HBM traffic); f32 inputs are accepted and cast once in the wrapper.

    Returns padded (B, CP) bf16 softmax outputs for the vision and text branches.
    """
    B, DV = image_features.shape
    _, S, H = pooled_output.shape
    CP = fused["wV"].shape[-1]                  # padded class dim (one 128-lane group)

    if image_features.dtype != jnp.bfloat16:
        image_features = image_features.astype(jnp.bfloat16)

    if pooled_output.dtype == jnp.bfloat16:
        # Free contiguous reshape; the BlockSpec below then reads only columns 0..H-1,
        # i.e. the [CLS] token, straight from HBM — no slice copy.
        txt2d = pooled_output.reshape(B, S * H)
    else:
        # Non-bf16 upstream: slice the CLS row first (small copy), then cast, so we
        # never cast/read the full (B, S, H) tensor.
        txt2d = pooled_output[:, 0, :].astype(jnp.bfloat16)

    TB = _choose_batch_tile(B, batch_tile)
    grid = (pl.cdiv(B, TB),)
    vmem_limit = _vmem_budget_bytes(TB, DV, H, CP)

    in_specs = [
        pl.BlockSpec((TB, DV), lambda i: (i, 0)),            # image-feature tile (bf16)
        pl.BlockSpec((TB, H),  lambda i: (i, 0)),            # CLS-token tile (bf16)
        pl.BlockSpec(fused["wV"].shape, lambda i: (0, 0)),    # weights stay resident
        pl.BlockSpec(fused["bV"].shape, lambda i: (0, 0)),
        pl.BlockSpec(fused["wT"].shape, lambda i: (0, 0)),
        pl.BlockSpec(fused["bT"].shape, lambda i: (0, 0)),
    ]
    out_specs = (pl.BlockSpec((TB, CP), lambda i: (i, 0)),
                 pl.BlockSpec((TB, CP), lambda i: (i, 0)))

    predV, predT = pl.pallas_call(
        _fusion_head_kernel,
        out_shape=(jax.ShapeDtypeStruct((B, CP), jnp.bfloat16),
                   jax.ShapeDtypeStruct((B, CP), jnp.bfloat16)),
        grid=grid,
        in_specs=in_specs,
        out_specs=out_specs,
        compiler_params=pltpu.CompilerParams(
            dimension_semantics=("parallel",),   # v7x: shard the batch across 2 TCs
            vmem_limit_bytes=vmem_limit),        # explicit, sized to the working set
    )(image_features, txt2d,
      fused["wV"], fused["bV"], fused["wT"], fused["bT"])
    return predV, predT


def language_and_vision_concat_forward(image_features, pooled_output,
                                       fused, num_classes, label=None):
    predV_p, predT_p = fusion_head(image_features, pooled_output, fused)
    predV = predV_p[:, :num_classes].astype(jnp.float32)
    predT = predT_p[:, :num_classes].astype(jnp.float32)
    # loss_fnV / loss_fnT are user-supplied callables in the PyTorch module;
    # with label=None the original forward returns None for both losses.
    # TODO(synk): plug external loss callables here when label is provided.
    lossV = None
    lossT = None
    return predV, predT, lossV, lossT


# ---------------------------------------------------------------------------
# Parameters
# ---------------------------------------------------------------------------
def init_raw_params(key, num_classes):
    """PyTorch-layout (in, out) weights for fcV/fcT/classV/classT."""
    ks = jax.random.split(key, 8)
    scale = 0.02
    return {
        "wV":  scale * jax.random.normal(ks[0], (1000, 100), jnp.float32),
        "bV":  scale * jax.random.normal(ks[1], (100,), jnp.float32),
        "wT":  scale * jax.random.normal(ks[2], (768, 100), jnp.float32),
        "bT":  scale * jax.random.normal(ks[3], (100,), jnp.float32),
        "wcV": scale * jax.random.normal(ks[4], (100, num_classes), jnp.float32),
        "bcV": scale * jax.random.normal(ks[5], (num_classes,), jnp.float32),
        "wcT": scale * jax.random.normal(ks[6], (100, num_classes), jnp.float32),
        "bcT": scale * jax.random.normal(ks[7], (num_classes,), jnp.float32),
    }


def fuse_params(raw, num_classes, *, weight_dtype=jnp.bfloat16):
    """Fold the two Linears per branch (exact in eval mode) and pad classes to exactly
    one 128-lane group (don't grow CP past 128 unless num_classes requires it)."""
    cp = max(128, _round_up(num_classes, 128))

    wVf = raw["wV"] @ raw["wcV"]                               # (1000, C) f32
    bVf = raw["bV"] @ raw["wcV"] + raw["bcV"]                  # (C,)      f32
    wTf = raw["wT"] @ raw["wcT"]                               # (768,  C) f32
    bTf = raw["bT"] @ raw["wcT"] + raw["bcT"]                  # (C,)      f32

    def pad_w(w):   # zero-pad class columns, store bf16 for the MXU
        return jnp.pad(w, ((0, 0), (0, cp - w.shape[-1]))).astype(weight_dtype)

    def pad_b(b):   # padded class columns get -1e30 -> softmax weight exactly 0
        return jnp.pad(b.reshape(1, -1), ((0, 0), (0, cp - b.shape[-1])),
                       constant_values=-1e30).astype(jnp.float32)

    return {"wV": pad_w(wVf), "bV": pad_b(bVf),
            "wT": pad_w(wTf), "bT": pad_b(bTf)}


# ---------------------------------------------------------------------------
# Pure-JAX reference (un-fused, f32) for correctness checking
# ---------------------------------------------------------------------------
def reference_forward(image_features, pooled_output, raw):
    txt = jnp.maximum(pooled_output[:, 0, :], 0.0)
    img = jnp.maximum(image_features, 0.0)
    hv = img @ raw["wV"] + raw["bV"]
    ht = txt @ raw["wT"] + raw["bT"]
    lv = hv @ raw["wcV"] + raw["bcV"]
    lt = ht @ raw["wcT"] + raw["bcT"]
    return jax.nn.softmax(lv, axis=-1), jax.nn.softmax(lt, axis=-1)


if __name__ == "__main__":
    key = jax.random.PRNGKey(0)
    k_img, k_txt, k_par = jax.random.split(key, 3)

    B, S, C = 2, 8, 4
    # Synthetic "vision_module(image)" logits and "language_module" hidden states.
    # Upstream feature extractors are assumed to emit bf16 (halves kernel HBM traffic).
    image_features = jax.random.normal(k_img, (B, 1000), jnp.float32).astype(jnp.bfloat16)
    pooled_output = jax.random.normal(k_txt, (B, S, 768), jnp.float32).astype(jnp.bfloat16)

    raw = init_raw_params(k_par, num_classes=C)
    fused = fuse_params(raw, num_classes=C)

    predV, predT, lossV, lossT = language_and_vision_concat_forward(
        image_features, pooled_output, fused, num_classes=C, label=None)
    jax.block_until_ready((predV, predT))

    assert predV.shape == (B, C) and predT.shape == (B, C)
    # Softmax rows sum to ~1 (bf16 stores -> relaxed tolerance).
    assert jnp.allclose(jnp.sum(predV, axis=-1), 1.0, atol=1e-2)
    assert jnp.allclose(jnp.sum(predT, axis=-1), 1.0, atol=1e-2)

    # Match the un-fused f32 reference on the same (bf16-rounded) inputs.
    refV, refT = reference_forward(image_features.astype(jnp.float32),
                                   pooled_output.astype(jnp.float32), raw)
    assert jnp.allclose(predV, refV, atol=2e-2)
    assert jnp.allclose(predT, refT, atol=2e-2)

    print("KERNEL_OK")
</pallas_src>

<mosaic_0001>
module attributes {stable_mosaic.version = 11 : i64} {
  func.func @_fusion_head_kernel(%arg0: i32, %arg1: memref<2x1000xbf16, #tpu.memory_space<vmem>>, %arg2: memref<2x768xbf16, #tpu.memory_space<vmem>>, %arg3: memref<1000x128xbf16, #tpu.memory_space<vmem>>, %arg4: memref<1x128xf32, #tpu.memory_space<vmem>>, %arg5: memref<768x128xbf16, #tpu.memory_space<vmem>>, %arg6: memref<1x128xf32, #tpu.memory_space<vmem>>, %arg7: memref<2x128xbf16, #tpu.memory_space<vmem>>, %arg8: memref<2x128xbf16, #tpu.memory_space<vmem>>) attributes {dimension_semantics = [#tpu.dimension_semantics<parallel>], iteration_bounds = array<i64: 1>, scalar_prefetch = 0 : i64, scratch_operands = 0 : i64, tpu.core_type = #tpu.core_type<tc>, window_params = [{transform_indices = @transform_0, window_bounds = array<i64: 2, 1000>}, {transform_indices = @transform_1, window_bounds = array<i64: 2, 768>}, {pipeline_mode = #tpu.pipeline_mode<synchronous>, transform_indices = @transform_2, window_bounds = array<i64: 1000, 128>}, {pipeline_mode = #tpu.pipeline_mode<synchronous>, transform_indices = @transform_3, window_bounds = array<i64: 1, 128>}, {pipeline_mode = #tpu.pipeline_mode<synchronous>, transform_indices = @transform_4, window_bounds = array<i64: 768, 128>}, {pipeline_mode = #tpu.pipeline_mode<synchronous>, transform_indices = @transform_5, window_bounds = array<i64: 1, 128>}, {transform_indices = @transform_6, window_bounds = array<i64: 2, 128>}, {transform_indices = @transform_7, window_bounds = array<i64: 2, 128>}]} {
    %c0 = arith.constant 0 : index
    %c0_0 = arith.constant 0 : index
    %0 = vector.load %arg1[%c0, %c0_0] : memref<2x1000xbf16, #tpu.memory_space<vmem>>, vector<2x1000xbf16>
    %1 = arith.extf %0 : vector<2x1000xbf16> to vector<2x1000xf32>
    %cst = arith.constant 0.000000e+00 : f32
    %2 = vector.broadcast %cst : f32 to vector<2x1000xf32>
    %3 = arith.maximumf %1, %2 : vector<2x1000xf32>
    %4 = arith.truncf %3 : vector<2x1000xf32> to vector<2x1000xbf16>
    %c0_1 = arith.constant 0 : index
    %c0_2 = arith.constant 0 : index
    %5 = vector.load %arg2[%c0_1, %c0_2] : memref<2x768xbf16, #tpu.memory_space<vmem>>, vector<2x768xbf16>
    %6 = arith.extf %5 : vector<2x768xbf16> to vector<2x768xf32>
    %cst_3 = arith.constant 0.000000e+00 : f32
    %7 = vector.broadcast %cst_3 : f32 to vector<2x768xf32>
    %8 = arith.maximumf %6, %7 : vector<2x768xf32>
    %9 = arith.truncf %8 : vector<2x768xf32> to vector<2x768xbf16>
    %c0_4 = arith.constant 0 : index
    %c0_5 = arith.constant 0 : index
    %10 = vector.load %arg3[%c0_4, %c0_5] : memref<1000x128xbf16, #tpu.memory_space<vmem>>, vector<1000x128xbf16>
    %cst_6 = arith.constant dense<0.000000e+00> : vector<2x128xf32>
    %11 = tpu.matmul %4, %10, %cst_6 {dimension_numbers = #tpu.dot_dimension_numbers<[1], [0], [0], [1], [0, 0, 1, 1], [], []>} : vector<2x1000xbf16>, vector<1000x128xbf16>, vector<2x128xf32> -> vector<2x128xf32>
    %c0_7 = arith.constant 0 : index
    %c0_8 = arith.constant 0 : index
    %12 = vector.load %arg4[%c0_7, %c0_8] : memref<1x128xf32, #tpu.memory_space<vmem>>, vector<1x128xf32>
    %13 = vector.broadcast %12 : vector<1x128xf32> to vector<2x128xf32>
    %14 = arith.addf %11, %13 : vector<2x128xf32>
    %c0_9 = arith.constant 0 : index
    %c0_10 = arith.constant 0 : index
    %15 = vector.load %arg5[%c0_9, %c0_10] : memref<768x128xbf16, #tpu.memory_space<vmem>>, vector<768x128xbf16>
    %cst_11 = arith.constant dense<0.000000e+00> : vector<2x128xf32>
    %16 = tpu.matmul %9, %15, %cst_11 {dimension_numbers = #tpu.dot_dimension_numbers<[1], [0], [0], [1], [0, 0, 1, 1], [], []>} : vector<2x768xbf16>, vector<768x128xbf16>, vector<2x128xf32> -> vector<2x128xf32>
    %c0_12 = arith.constant 0 : index
    %c0_13 = arith.constant 0 : index
    %17 = vector.load %arg6[%c0_12, %c0_13] : memref<1x128xf32, #tpu.memory_space<vmem>>, vector<1x128xf32>
    %18 = vector.broadcast %17 : vector<1x128xf32> to vector<2x128xf32>
    %19 = arith.addf %16, %18 : vector<2x128xf32>
    %cst_14 = arith.constant dense<0xFF800000> : vector<2xf32>
    %20 = vector.multi_reduction <maximumf>, %14, %cst_14 [1] : vector<2x128xf32> to vector<2xf32>
    %21 = vector.shape_cast %20 : vector<2xf32> to vector<2x1xf32>
    %22 = vector.broadcast %21 : vector<2x1xf32> to vector<2x128xf32>
    %23 = arith.subf %14, %22 : vector<2x128xf32>
    %cst_15 = arith.constant dense<0xFF800000> : vector<2xf32>
    %24 = vector.multi_reduction <maximumf>, %19, %cst_15 [1] : vector<2x128xf32> to vector<2xf32>
    %25 = vector.shape_cast %24 : vector<2xf32> to vector<2x1xf32>
    %26 = vector.broadcast %25 : vector<2x1xf32> to vector<2x128xf32>
    %27 = arith.subf %19, %26 : vector<2x128xf32>
    %28 = math.exp %23 : vector<2x128xf32>
    %29 = math.exp %27 : vector<2x128xf32>
    %cst_16 = arith.constant dense<0.000000e+00> : vector<2xf32>
    %30 = vector.multi_reduction <add>, %28, %cst_16 [1] : vector<2x128xf32> to vector<2xf32>
    %31 = vector.shape_cast %30 : vector<2xf32> to vector<2x1xf32>
    %32 = vector.broadcast %31 : vector<2x1xf32> to vector<2x128xf32>
    %33 = arith.divf %28, %32 : vector<2x128xf32>
    %cst_17 = arith.constant dense<0.000000e+00> : vector<2xf32>
    %34 = vector.multi_reduction <add>, %29, %cst_17 [1] : vector<2x128xf32> to vector<2xf32>
    %35 = vector.shape_cast %34 : vector<2xf32> to vector<2x1xf32>
    %36 = vector.broadcast %35 : vector<2x1xf32> to vector<2x128xf32>
    %37 = arith.divf %29, %36 : vector<2x128xf32>
    %38 = arith.truncf %33 : vector<2x128xf32> to vector<2x128xbf16>
    %c0_18 = arith.constant 0 : index
    %c0_19 = arith.constant 0 : index
    %39 = vector.load %arg7[%c0_18, %c0_19] : memref<2x128xbf16, #tpu.memory_space<vmem>>, vector<2x128xbf16>
    tpu.vector_store %arg7[%c0_18, %c0_19], %38 {strides = array<i32>} : memref<2x128xbf16, #tpu.memory_space<vmem>>, vector<2x128xbf16>,
    %40 = arith.truncf %37 : vector<2x128xf32> to vector<2x128xbf16>
    %c0_20 = arith.constant 0 : index
    %c0_21 = arith.constant 0 : index
    %41 = vector.load %arg8[%c0_20, %c0_21] : memref<2x128xbf16, #tpu.memory_space<vmem>>, vector<2x128xbf16>
    tpu.vector_store %arg8[%c0_20, %c0_21], %40 {strides = array<i32>} : memref<2x128xbf16, #tpu.memory_space<vmem>>, vector<2x128xbf16>,
    return
  }
  func.func @transform_0(%arg0: i32) -> (i32, i32) {
    %c0_i32 = arith.constant 0 : i32
    %c0_i32_0 = arith.constant 0 : i32
    return %arg0, %c0_i32 : i32, i32
  }
  func.func @transform_1(%arg0: i32) -> (i32, i32) {
    %c0_i32 = arith.constant 0 : i32
    %c0_i32_0 = arith.constant 0 : i32
    return %arg0, %c0_i32 : i32, i32
  }
  func.func @transform_2(%arg0: i32) -> (i32, i32) {
    %c0_i32 = arith.constant 0 : i32
    %c0_i32_0 = arith.constant 0 : i32
    %c0_i32_1 = arith.constant 0 : i32
    return %c0_i32, %c0_i32_0 : i32, i32
  }
  func.func @transform_3(%arg0: i32) -> (i32, i32) {
    %c0_i32 = arith.constant 0 : i32
    %c0_i32_0 = arith.constant 0 : i32
    %c0_i32_1 = arith.constant 0 : i32
    return %c0_i32, %c0_i32_0 : i32, i32
  }
  func.func @transform_4(%arg0: i32) -> (i32, i32) {
    %c0_i32 = arith.constant 0 : i32
    %c0_i32_0 = arith.constant 0 : i32
    %c0_i32_1 = arith.constant 0 : i32
    return %c0_i32, %c0_i32_0 : i32, i32
  }
  func.func @transform_5(%arg0: i32) -> (i32, i32) {
    %c0_i32 = arith.constant 0 : i32
    %c0_i32_0 = arith.constant 0 : i32
    %c0_i32_1 = arith.constant 0 : i32
    return %c0_i32, %c0_i32_0 : i32, i32
  }
  func.func @transform_6(%arg0: i32) -> (i32, i32) {
    %c0_i32 = arith.constant 0 : i32
    %c0_i32_0 = arith.constant 0 : i32
    return %arg0, %c0_i32 : i32, i32
  }
  func.func @transform_7(%arg0: i32) -> (i32, i32) {
    %c0_i32 = arith.constant 0 : i32
    %c0_i32_0 = arith.constant 0 : i32
    return %arg0, %c0_i32 : i32, i32
  }
}

</mosaic_0001>

<bundles_post_ra>
// kernel: tpu_custom_call.1
= control target key start
LH: loop header
LB: loop body
LE: loop exit
PB: predicated region body
PF: predicated region fallthrough
CT: control target
= control target key end

     0   :  { %13 = vsyncpa [#allocation3], 0  ;;  %s2134_s0 = inlined_call_operand.hbm [shape: bf16[2,1000], index: 0, kind: input, shape index: {}]   ;;  %s2135_s1 = inlined_call_operand.hbm [shape: bf16[2,6144], index: 1, kind: input, shape index: {}]   ;;  %s2136_s2 = inlined_call_operand.hbm [shape: bf16[1000,128], index: 2, kind: input, shape index: {}]   ;;  %s2137_s3 = inlined_call_operand.vmem [shape: f32[1,128], index: 3, kind: input, shape index: {}]   ;;  %s2138_s4 = inlined_call_operand.hbm [shape: bf16[768,128], index: 4, kind: input, shape index: {}]   ;;  %s2139_s5 = inlined_call_operand.vmem [shape: f32[1,128], index: 5, kind: input, shape index: {}]   ;;  %s2140_s6 = inlined_call_operand.hbm [shape: bf16[2,128], index: 6, kind: output, shape index: {0}]   ;;  %s2141_s7 = inlined_call_operand.hbm [shape: bf16[2,128], index: 7, kind: output, shape index: {1}]  }
   0x1   :  { %14 = vsyncpa [#allocation6], 0 }
   0x2   :  { %15 = vsyncpa [#allocation9], 0 }
   0x3   :  { %16 = vsyncpa [#allocation4], 0  ;;  %s34_s26 = sshll.u32 %s2135_s1, 4  ;;  %s35_s26 = int_to_ptr.hbm [resolvable:$true] %s34_s26 }
   0x4   :  { %17 = vsyncpa [#allocation12], 0  ;;  %s2042_s27 = smov [#allocation5]   ;;  %s23_s8 = sshll.u32 %s2134_s0, 4  ;;  %s24_s8 = int_to_ptr.hbm [resolvable:$true] %s23_s8 }
   0x5   :  { %s36_s28 = sshll.u32 %s2042_s27, 4  ;;  %s2043_s9 = smov [#allocation2]   ;;  %s37_s28 = int_to_ptr.vmem [resolvable:$true] %s36_s28 }
   0x6   :  { %39 = dma.hbm_to_vmem [thread:$0]  %s35_s26, 96, %s37_s28, [#allocation6]  }
   0x7   :  { %s25_s10 = sshll.u32 %s2043_s9, 4  ;;  %s44_s13 = sshll.u32 %s2136_s2, 4  ;;  %s26_s10 = int_to_ptr.vmem [resolvable:$true] %s25_s10  ;;  %s45_s13 = int_to_ptr.hbm [resolvable:$true] %s44_s13 }
   0x8   :  { %28 = dma.hbm_to_vmem [thread:$0]  %s24_s8, 128, %s26_s10, [#allocation3]  }
   0x9   :  { %s2044_s1 = smov [#allocation7]   ;;  %s59_s17 = sshll.u32 %s2138_s4, 4  ;;  %s60_s17 = int_to_ptr.hbm [resolvable:$true] %s59_s17 }
   0xa   :  { %s46_s14 = sshll.u32 %s2044_s1, 4  ;;  %s2045_s18 = smov 64   ;;  %s47_s14 = int_to_ptr.vmem [resolvable:$true] %s46_s14 }
   0xb   :  { %s2046_s0 = smov 4   ;;  %s2047_s19 = smov [#allocation8]  }
   0xc   :  { %52 = dma.hbm_to_vmem [thread:$0]  %s45_s13, 8000, %s47_s14, [#allocation6], %s2045_s18, %s2045_s18, %s2046_s0  }
   0xd   :  { %s61_s20 = sshll.u32 %s2047_s19, 4  ;;  %s62_s20 = int_to_ptr.vmem [resolvable:$true] %s61_s20 }
   0xe   :  { %67 = dma.hbm_to_vmem [thread:$0]  %s60_s17, 6144, %s62_s20, [#allocation9], %s2045_s18, %s2045_s18, %s2046_s0  }
   0xf   :  { %2032 = dma.done.wait [#allocation3], 128  }
  0x10   :  { %2033 = vsyncadd [#allocation3], 4294967168 }
  0x11   :  { %2034 = dma.done.wait [#allocation6], 8096  }
  0x12   :  { %2035 = vsyncadd [#allocation6], 4294959200 }
  0x13   :  { %2036 = dma.done.wait [#allocation9], 6144  }
  0x14   :  { %2037 = vsyncadd [#allocation9], 4294961152  ;;  %v1767_v0 = vld [vmem:[#allocation7 + $0x38] sm:$0xff]  ;;  %v1766_v4 = vld [vmem:[#allocation7 + $0x30] sm:$0xff]  ;;  %vm657_vm0 = vcmask 1043456   ;;  %vm653_vm1 = vcmask 850944  }
  0x15   :  { %v1783_v1 = vld [vmem:[#allocation7 + $0xb8] sm:$0xff]  ;;  %661 = vmatpush.bf16.msra.mxu0 %v1767_v0  ;;  %v1782_v5 = vld [vmem:[#allocation7 + $0xb0] sm:$0xff]  ;;  %v1765_v8 = vld [vmem:[#allocation7 + $0x28] sm:$0xff]  ;;  %vm1231_vm2 = vcmask 1041408   ;;  %s1291_s25 = sshll.u32 %s2140_s6, 4  ;;  %s2049_s6 = smov [#allocation11]   ;;  %s1292_s25 = int_to_ptr.hbm [resolvable:$true] %s1291_s25 }
  0x16   :  { %v1791_v2 = vld [vmem:[#allocation7 + $0xf8] sm:$0xff]  ;;  %687 = vmatpush.bf16.msra.mxu2 %v1783_v1  ;;  %v1790_v6 = vld [vmem:[#allocation7 + $0xf0] sm:$0xff]  ;;  %v1781_v9 = vld [vmem:[#allocation7 + $0xa8] sm:$0xff]  ;;  %s1300_s26 = sshll.u32 %s2049_s6, 4  ;;  %s1302_s29 = sshll.u32 %s2141_s7, 4  ;;  %s1301_s26 = int_to_ptr.vmem [resolvable:$true] %s1300_s26  ;;  %s1303_s29 = int_to_ptr.hbm [resolvable:$true] %s1302_s29 }
  0x17   :  { %v1775_v3 = vld [vmem:[#allocation7 + $0x78] sm:$0xff]  ;;  %700 = vmatpush.bf16.msra.mxu3 %v1791_v2  ;;  %v1774_v7 = vld [vmem:[#allocation7 + $0x70] sm:$0xff]  ;;  %v1789_v10 = vld [vmem:[#allocation7 + $0xe8] sm:$0xff] }
  0x18   :  { %674 = vmatpush.bf16.msra.mxu1 %v1775_v3  ;;  %v1773_v11 = vld [vmem:[#allocation7 + $0x68] sm:$0xff]  ;;  %v1764_v12 = vld [vmem:[#allocation7 + $0x20] sm:$0xff]  ;;  %v1763_v16 = vld [vmem:[#allocation7 + $0x18] sm:$0xff] }
  0x19   :  { %662 = vmatpush.bf16.msra.mxu0 %v1766_v4  ;;  %v1780_v13 = vld [vmem:[#allocation7 + $0xa0] sm:$0xff]  ;;  %v1779_v17 = vld [vmem:[#allocation7 + $0x98] sm:$0xff]  ;;  %v1762_v23 = vld [vmem:[#allocation7 + $0x10] sm:$0xff] }
  0x1a   :  { %688 = vmatpush.bf16.msra.mxu2 %v1782_v5  ;;  %v1788_v14 = vld [vmem:[#allocation7 + $0xe0] sm:$0xff]  ;;  %v1787_v18 = vld [vmem:[#allocation7 + $0xd8] sm:$0xff]  ;;  %v1778_v24 = vld [vmem:[#allocation7 + $0x90] sm:$0xff] }
  0x1b   :  { %701 = vmatpush.bf16.msra.mxu3 %v1790_v6  ;;  %v1772_v15 = vld [vmem:[#allocation7 + $0x60] sm:$0xff]  ;;  %v1771_v19 = vld [vmem:[#allocation7 + $0x58] sm:$0xff]  ;;  %v1786_v25 = vld [vmem:[#allocation7 + $0xd0] sm:$0xff] }
  0x1c   :  { %675 = vmatpush.bf16.msra.mxu1 %v1774_v7  ;;  %v87_v20 = vld [vmem:[#allocation2] sm:$0xff]  ;;  %v121_v28 = vld [vmem:[#allocation5] sm:$0x3f]  ;;  %v1761_v33 = vld [vmem:[#allocation7 + $0x8] sm:$0xff] }
  0x1d   :  { %663 = vmatpush.bf16.msra.mxu0 %v1765_v8  ;;  %v88_v21 = vunpack.c.l.bf16 %v87_v20  ;;  %v89_v22 = vunpack.c.h.bf16 %v87_v20  ;;  %v273_v26 = vld [vmem:[#allocation7 + $0x1f0] sm:$0xf]  ;;  %v122_v32 = vunpack.c.l.bf16 %v121_v28  ;;  %v1777_v34 = vld [vmem:[#allocation7 + $0x88] sm:$0xff]  ;;  %v1760_v37 = vld [vmem:[#allocation7] sm:$0xff]  ;;  %v123_v51 = vunpack.c.h.bf16 %v121_v28 }
  0x1e   :  { %689 = vmatpush.bf16.msra.mxu2 %v1781_v9  ;;  %v1770_v29 = vld [vmem:[#allocation7 + $0x50] sm:$0xff]  ;;  %v527_v31 = vunpack.c.l.b16 %v273_v26  ;;  %v1785_v35 = vld [vmem:[#allocation7 + $0xc8] sm:$0xff]  ;;  %v1776_v38 = vld [vmem:[#allocation7 + $0x80] sm:$0xff] }
  0x1f   :  { %702 = vmatpush.bf16.msra.mxu3 %v1789_v10  ;;  %v90_v27 = vmax.f32 %v88_v21, 0.0  ;;  %v91_v30 = vmax.f32 %v89_v22, 0.0  ;;  %v1769_v36 = vld [vmem:[#allocation7 + $0x48] sm:$0xff]  ;;  %v124_v40 = vmax.f32 %v122_v32, 0.0  ;;  %v1784_v41 = vld [vmem:[#allocation7 + $0xc0] sm:$0xff]  ;;  %v1799_v42 = vld [vmem:[#allocation7 + $0x138] sm:$0xff] }
  0x20   :  { %676 = vmatpush.bf16.msra.mxu1 %v1773_v11  ;;  %v590_v39 = vpack.c.b16 %v527_v31, %v527_v31  ;;  %v1815_v43 = vld [vmem:[#allocation7 + $0x1b8] sm:$0xff]  ;;  %v1768_v49 = vld [vmem:[#allocation7 + $0x40] sm:$0xff]  ;;  %v1798_v54 = vld [vmem:[#allocation7 + $0x130] sm:$0xff]  ;;  %v125_v62 = vmax.f32 %v123_v51, 0.0 }
  0x21   :  { %664 = vmatpush.bf16.msra.mxu0 %v1764_v12  ;;  %94 = vst [vmem:[#allocation1] ss:$4 sm:$0xff] %v90_v27  ;;  %v1807_v52 = vld [vmem:[#allocation7 + $0x178] sm:$0xff]  ;;  %v1814_v56 = vld [vmem:[#allocation7 + $0x1b0] sm:$0xff]  ;;  %v1821_v57 = vld [vmem:[#allocation7 + $0x1e8] sm:$0xff] }
  0x22   :  { %690 = vmatpush.bf16.msra.mxu2 %v1780_v13  ;;  %96 = vst [vmem:[#allocation1 + $0x20] ss:$4 sm:$0xff] %v91_v30  ;;  %v659_v48 = vsel %vm657_vm0, %v590_v39, 0  ;;  %v1806_v59 = vld [vmem:[#allocation7 + $0x170] sm:$0xff]  ;;  %v1797_v1 = vld [vmem:[#allocation7 + $0x128] sm:$0xff]  ;;  %v1820_v3 = vld [vmem:[#allocation7 + $0x1e0] sm:$0xff] }
  0x23   :  { %703 = vmatpush.bf16.msra.mxu3 %v1788_v14  ;;  %v1813_v2 = vld [vmem:[#allocation7 + $0x1a8] sm:$0xff]  ;;  %v1796_v5 = vld [vmem:[#allocation7 + $0x120] sm:$0xff]  ;;  %v1819_v7 = vld [vmem:[#allocation7 + $0x1d8] sm:$0xff] }
  0x24   :  { %677 = vmatpush.bf16.msra.mxu1 %v1772_v15  ;;  %v1805_v4 = vld [vmem:[#allocation7 + $0x168] sm:$0xff]  ;;  %v1812_v6 = vld [vmem:[#allocation7 + $0x1a0] sm:$0xff]  ;;  %v1795_v9 = vld [vmem:[#allocation7 + $0x118] sm:$0xff] }
  0x25   :  { %665 = vmatpush.bf16.msra.mxu0 %v1763_v16  ;;  %v1804_v8 = vld [vmem:[#allocation7 + $0x160] sm:$0xff]  ;;  %v1811_v10 = vld [vmem:[#allocation7 + $0x198] sm:$0xff]  ;;  %v1818_v11 = vld [vmem:[#allocation7 + $0x1d0] sm:$0xff] }
  0x26   :  { %691 = vmatpush.bf16.msra.mxu2 %v1779_v17  ;;  %v1803_v12 = vld [vmem:[#allocation7 + $0x158] sm:$0xff]  ;;  %v1794_v13 = vld [vmem:[#allocation7 + $0x110] sm:$0xff]  ;;  %v1817_v15 = vld [vmem:[#allocation7 + $0x1c8] sm:$0xff] }
  0x27   :  { %704 = vmatpush.bf16.msra.mxu3 %v1787_v18  ;;  %v1810_v14 = vld [vmem:[#allocation7 + $0x190] sm:$0xff]  ;;  %v1793_v17 = vld [vmem:[#allocation7 + $0x108] sm:$0xff]  ;;  %v1792_v22 = vld [vmem:[#allocation7 + $0x100] sm:$0xff] }
  0x28   :  { %678 = vmatpush.bf16.msra.mxu1 %v1771_v19  ;;  %v99_v44 = vld.sshfl [vmem:[#allocation1 + $0x10] sm:$0xff pattern:$0x73625140]  ;;  %v97_v45 = vld.sshfl [vmem:[#allocation1] sm:$0xff pattern:$0x73625140] }
  0x29   :  { %666 = vmatpush.bf16.msra.mxu0 %v1762_v23  ;;  %v100_v46 = vld.sshfl [vmem:[#allocation1 + $0x18] sm:$0xff pattern:$0x73625140]  ;;  %v98_v47 = vld.sshfl [vmem:[#allocation1 + $0x8] sm:$0xff pattern:$0x73625140]  ;;  %v115_v50 = vpack.c.bf16 %v99_v44, %v99_v44  ;;  %v113_v53 = vpack.c.bf16 %v97_v45, %v97_v45 }
  0x2a   :  { %692 = vmatpush.bf16.msra.mxu2 %v1778_v24  ;;  %128 = vst [vmem:[#allocation1] ss:$4 sm:$0xff] %v124_v40  ;;  %v116_v55 = vpack.c.bf16 %v100_v46, %v100_v46  ;;  %v2102_v58 = vld.sshfl [vmem:[#allocation1 + $0x30] sm:$0xff pattern:$0x73625140]  ;;  %v114_v60 = vpack.c.bf16 %v98_v47, %v98_v47  ;;  %v1802_v16 = vld [vmem:[#allocation7 + $0x150] sm:$0xff] }
  0x2b   :  { %705 = vmatpush.bf16.msra.mxu3 %v1786_v25  ;;  %v2104_v61 = vld.sshfl [vmem:[#allocation1 + $0x20] sm:$0xff pattern:$0x73625140]  ;;  %v2106_v63 = vld.sshfl [vmem:[#allocation1 + $0x38] sm:$0xff pattern:$0x73625140]  ;;  %v119_v30 = vpack.c.bf16 %v2102_v58, %v2102_v58 }
  0x2c   :  { %679 = vmatpush.bf16.msra.mxu1 %v1770_v29  ;;  %v2108_v0 = vld.sshfl [vmem:[#allocation1 + $0x28] sm:$0xff pattern:$0x73625140]  ;;  %v1809_v18 = vld [vmem:[#allocation7 + $0x188] sm:$0xff]  ;;  %v1816_v19 = vld [vmem:[#allocation7 + $0x1c0] sm:$0xff]  ;;  %v120_v23 = vpack.c.bf16 %v2106_v63, %v2106_v63  ;;  %v117_v29 = vpack.c.bf16 %v2104_v61, %v2104_v61 }
  0x2d   :  { %667 = vmatpush.bf16.msra.mxu0 %v1761_v33  ;;  %130 = vst [vmem:[#allocation1 + $0x20] ss:$4 sm:$0xff] %v125_v62  ;;  %v1829_v20 = vld [vmem:[#allocation8 + $0x38] sm:$0xff]  ;;  %v1808_v24 = vld [vmem:[#allocation7 + $0x180] sm:$0xff]  ;;  %v1842_v44 = vld [vmem:[#allocation8 + $0xa0] sm:$0xff] }
  0x2e   :  { %693 = vmatpush.bf16.msra.mxu2 %v1777_v34  ;;  %v1801_v21 = vld [vmem:[#allocation7 + $0x148] sm:$0xff]  ;;  %v1800_v28 = vld [vmem:[#allocation7 + $0x140] sm:$0xff]  ;;  %v118_v34 = vpack.c.bf16 %v2108_v0, %v2108_v0  ;;  %v1846_v0 = vld [vmem:[#allocation8 + $0xc0] sm:$0xff] }
  0x2f   :  { %706 = vmatpush.bf16.msra.mxu3 %v1785_v35  ;;  %v1837_v25 = vld [vmem:[#allocation8 + $0x78] sm:$0xff]  ;;  %v1828_v26 = vld [vmem:[#allocation8 + $0x30] sm:$0xff]  ;;  %v1827_v33 = vld [vmem:[#allocation8 + $0x28] sm:$0xff] }
  0x30   :  { %680 = vmatpush.bf16.msra.mxu1 %v1769_v36  ;;  %v1853_v27 = vld [vmem:[#allocation8 + $0xf8] sm:$0xff]  ;;  %v1836_v32 = vld [vmem:[#allocation8 + $0x70] sm:$0xff]  ;;  %v1851_v39 = vld [vmem:[#allocation8 + $0xe8] sm:$0xff] }
  0x31   :  { %668 = vmatpush.bf16.msra.mxu0 %v1760_v37  ;;  %v1845_v31 = vld [vmem:[#allocation8 + $0xb8] sm:$0xff]  ;;  %v1852_v35 = vld [vmem:[#allocation8 + $0xf0] sm:$0xff]  ;;  %v1835_v37 = vld [vmem:[#allocation8 + $0x68] sm:$0xff] }
  0x32   :  { %694 = vmatpush.bf16.msra.mxu2 %v1776_v38  ;;  %v1844_v36 = vld [vmem:[#allocation8 + $0xb0] sm:$0xff]  ;;  %v1826_v38 = vld [vmem:[#allocation8 + $0x20] sm:$0xff]  ;;  %v1843_v40 = vld [vmem:[#allocation8 + $0xa8] sm:$0xff] }
  0x33   :  { %707 = vmatpush.bf16.msra.mxu3 %v1784_v41  ;;  %v1834_v41 = vld [vmem:[#allocation8 + $0x60] sm:$0xff]  ;;  %v1833_v45 = vld [vmem:[#allocation8 + $0x58] sm:$0xff]  ;;  %v1824_v46 = vld [vmem:[#allocation8 + $0x10] sm:$0xff] }
  0x34   :  { %681 = vmatpush.bf16.msra.mxu1 %v1768_v49  ;;  %669 = vmatmul.bf16.vlgmr.msra.gmra.mxu0 %v113_v53  ;;  %v1849_v47 = vld [vmem:[#allocation8 + $0xd8] sm:$0xff]  ;;  %v1832_v49 = vld [vmem:[#allocation8 + $0x50] sm:$0xff]  ;;  %v1831_v53 = vld [vmem:[#allocation8 + $0x48] sm:$0xff] }
  0x35   :  { %713 = vmatpush.bf16.msrb.mxu0 %v1799_v42  ;;  %695 = vmatmul.bf16.vlgmr.msra.gmra.mxu2 %v115_v50  ;;  %v1825_v42 = vld [vmem:[#allocation8 + $0x18] sm:$0xff]  ;;  %v1823_v50 = vld [vmem:[#allocation8 + $0x8] sm:$0xff]  ;;  %v1848_v51 = vld [vmem:[#allocation8 + $0xd0] sm:$0xff] }
  0x36   :  { %739 = vmatpush.bf16.msrb.mxu2 %v1815_v43  ;;  %708 = vmatmul.bf16.vlgmr.msra.gmra.mxu3 %v116_v55  ;;  %v1850_v43 = vld [vmem:[#allocation8 + $0xe0] sm:$0xff]  ;;  %v131_v55 = vld.sshfl [vmem:[#allocation1] sm:$0xff pattern:$0x73625140]  ;;  %v1839_v58 = vld [vmem:[#allocation8 + $0x88] sm:$0xff] }
  0x37   :  { %753 = vmatpush.bf16.msrb.mxu3 %v659_v48  ;;  %682 = vmatmul.bf16.vlgmr.msra.gmra.mxu1 %v114_v60  ;;  %v1841_v48 = vld [vmem:[#allocation8 + $0x98] sm:$0xff]  ;;  %v143_v60 = vpack.c.bf16 %v131_v55, %v131_v55  ;;  %v1860_v63 = vld [vmem:[#allocation8 + $0x130] sm:$0xff] }
  0x38   :  { %726 = vmatpush.bf16.msrb.mxu1 %v1807_v52  ;;  %v1840_v52 = vld [vmem:[#allocation8 + $0x90] sm:$0xff]  ;;  %v132_v61 = vld.sshfl [vmem:[#allocation1 + $0x8] sm:$0xff pattern:$0x73625140] }
  0x39   :  { %714 = vmatpush.bf16.msrb.mxu0 %v1798_v54  ;;  %v1822_v54 = vld [vmem:[#allocation8] sm:$0xff]  ;;  %v1869_v62 = vld [vmem:[#allocation8 + $0x178] sm:$0xff] }
  0x3a   :  { %740 = vmatpush.bf16.msrb.mxu2 %v1814_v56  ;;  %v1861_v56 = vld [vmem:[#allocation8 + $0x138] sm:$0xff] }
  0x3b   :  { %754 = vmatpush.bf16.msrb.mxu3 %v1821_v57  ;;  %v1847_v57 = vld [vmem:[#allocation8 + $0xc8] sm:$0xff] }
  0x3c   :  { %727 = vmatpush.bf16.msrb.mxu1 %v1806_v59  ;;  %v1830_v59 = vld [vmem:[#allocation8 + $0x40] sm:$0xff] }
  0x3d   :  { %715 = vmatpush.bf16.msrb.mxu0 %v1797_v1  ;;  %v134_v1 = vld.sshfl [vmem:[#allocation1 + $0x18] sm:$0xff pattern:$0x73625140] }
  0x3e   :  { %741 = vmatpush.bf16.msrb.mxu2 %v1813_v2  ;;  %v144_v2 = vpack.c.bf16 %v132_v61, %v132_v61 }
  0x3f   :  { %755 = vmatpush.bf16.msrb.mxu3 %v1820_v3  ;;  %v1838_v3 = vld [vmem:[#allocation8 + $0x80] sm:$0xff] }
  0x40   :  { %728 = vmatpush.bf16.msrb.mxu1 %v1805_v4  ;;  %v133_v4 = vld.sshfl [vmem:[#allocation1 + $0x10] sm:$0xff pattern:$0x73625140] }
  0x41   :  { %716 = vmatpush.bf16.msrb.mxu0 %v1796_v5  ;;  %v1868_v5 = vld [vmem:[#allocation8 + $0x170] sm:$0xff] }
  0x42   :  { %742 = vmatpush.bf16.msrb.mxu2 %v1812_v6  ;;  %v146_v6 = vpack.c.bf16 %v134_v1, %v134_v1 }
  0x43   :  { %756 = vmatpush.bf16.msrb.mxu3 %v1819_v7  ;;  %v1859_v7 = vld [vmem:[#allocation8 + $0x128] sm:$0xff] }
  0x44   :  { %729 = vmatpush.bf16.msrb.mxu1 %v1804_v8  ;;  %v145_v8 = vpack.c.bf16 %v133_v4, %v133_v4 }
  0x45   :  { %717 = vmatpush.bf16.msrb.mxu0 %v1795_v9  ;;  %v1867_v9 = vld [vmem:[#allocation8 + $0x168] sm:$0xff] }
  0x46   :  { %743 = vmatpush.bf16.msrb.mxu2 %v1811_v10  ;;  %v1858_v10 = vld [vmem:[#allocation8 + $0x120] sm:$0xff] }
  0x47   :  { %757 = vmatpush.bf16.msrb.mxu3 %v1818_v11  ;;  %v1866_v11 = vld [vmem:[#allocation8 + $0x160] sm:$0xff] }
  0x48   :  { %730 = vmatpush.bf16.msrb.mxu1 %v1803_v12  ;;  %v1857_v12 = vld [vmem:[#allocation8 + $0x118] sm:$0xff] }
  0x49   :  { %718 = vmatpush.bf16.msrb.mxu0 %v1794_v13  ;;  %v1865_v13 = vld [vmem:[#allocation8 + $0x158] sm:$0xff] }
  0x4a   :  { %744 = vmatpush.bf16.msrb.mxu2 %v1810_v14  ;;  %v1856_v14 = vld [vmem:[#allocation8 + $0x110] sm:$0xff] }
  0x4b   :  { %758 = vmatpush.bf16.msrb.mxu3 %v1817_v15  ;;  %v1864_v15 = vld [vmem:[#allocation8 + $0x150] sm:$0xff] }
  0x4c   :  { %731 = vmatpush.bf16.msrb.mxu1 %v1802_v16  ;;  %v1855_v16 = vld [vmem:[#allocation8 + $0x108] sm:$0xff] }
  0x4d   :  { %719 = vmatpush.bf16.msrb.mxu0 %v1793_v17  ;;  %v1863_v17 = vld [vmem:[#allocation8 + $0x148] sm:$0xff] }
  0x4e   :  { %745 = vmatpush.bf16.msrb.mxu2 %v1809_v18  ;;  %v1854_v18 = vld [vmem:[#allocation8 + $0x100] sm:$0xff] }
  0x4f   :  { %759 = vmatpush.bf16.msrb.mxu3 %v1816_v19  ;;  %v135_v19 = vld.sshfl [vmem:[#allocation1 + $0x20] sm:$0xff pattern:$0x73625140] }
  0x50   :  { %732 = vmatpush.bf16.msrb.mxu1 %v1801_v21  ;;  %v1862_v21 = vld [vmem:[#allocation8 + $0x140] sm:$0xff] }
  0x51   :  { %720 = vmatpush.bf16.msrb.mxu0 %v1792_v22  ;;  %v136_v22 = vld.sshfl [vmem:[#allocation1 + $0x28] sm:$0xff pattern:$0x73625140] }
  0x52   :  { %1567 = vmatmul.msk.bf16.vlgmr.msrb.gmra.mxu3 %vm653_vm1, %v120_v23  ;;  %746 = vmatpush.bf16.msrb.mxu2 %v1808_v24  ;;  %v148_v23 = vpack.c.bf16 %v136_v22, %v136_v22 }
  0x53   :  { %1153 = vmatpush.bf16.msra.mxu3 %v1829_v20  ;;  %v147_v20 = vpack.c.bf16 %v135_v19, %v135_v19 }
  0x54   :  { %733 = vmatpush.bf16.msrb.mxu1 %v1800_v28  ;;  %721 = vmatmul.bf16.vlgmr.msrb.gmra.mxu0 %v117_v29  ;;  %v1878_v29 = vld [vmem:[%s2137_s3] ss:$0 sm:$0xff] }
  0x55   :  { %1166 = vmatpush.bf16.msra.mxu0 %v1837_v25  ;;  %747 = vmatmul.bf16.vlgmr.msrb.gmra.mxu2 %v119_v30 }
  0x56   :  { %1192 = vmatpush.bf16.msra.mxu2 %v1853_v27 }
  0x57   :  { %1154 = vmatpush.bf16.msra.mxu3 %v1828_v26  ;;  %734 = vmatmul.bf16.vlgmr.msrb.gmra.mxu1 %v118_v34 }
  0x58   :  { %1179 = vmatpush.bf16.msra.mxu1 %v1845_v31 }
  0x59   :  { %1167 = vmatpush.bf16.msra.mxu0 %v1836_v32 }
  0x5a   :  { %1193 = vmatpush.bf16.msra.mxu2 %v1852_v35 }
  0x5b   :  { %1155 = vmatpush.bf16.msra.mxu3 %v1827_v33 }
  0x5c   :  { %1180 = vmatpush.bf16.msra.mxu1 %v1844_v36 }
  0x5d   :  { %1168 = vmatpush.bf16.msra.mxu0 %v1835_v37 }
  0x5e   :  { %1194 = vmatpush.bf16.msra.mxu2 %v1851_v39 }
  0x5f   :  { %1156 = vmatpush.bf16.msra.mxu3 %v1826_v38 }
  0x60   :  { %1181 = vmatpush.bf16.msra.mxu1 %v1843_v40 }
  0x61   :  { %1169 = vmatpush.bf16.msra.mxu0 %v1834_v41 }
  0x62   :  { %1195 = vmatpush.bf16.msra.mxu2 %v1850_v43 }
  0x63   :  { %1157 = vmatpush.bf16.msra.mxu3 %v1825_v42 }
  0x64   :  { %1182 = vmatpush.bf16.msra.mxu1 %v1842_v44 }
  0x65   :  { %1170 = vmatpush.bf16.msra.mxu0 %v1833_v45 }
  0x66   :  { %1196 = vmatpush.bf16.msra.mxu2 %v1849_v47 }
  0x67   :  { %1158 = vmatpush.bf16.msra.mxu3 %v1824_v46 }
  0x68   :  { %1183 = vmatpush.bf16.msra.mxu1 %v1841_v48 }
  0x69   :  { %1171 = vmatpush.bf16.msra.mxu0 %v1832_v49 }
  0x6a   :  { %1197 = vmatpush.bf16.msra.mxu2 %v1848_v51 }
  0x6b   :  { %1159 = vmatpush.bf16.msra.mxu3 %v1823_v50 }
  0x6c   :  { %1184 = vmatpush.bf16.msra.mxu1 %v1840_v52 }
  0x6d   :  { %1172 = vmatpush.bf16.msra.mxu0 %v1831_v53 }
  0x6e   :  { %1198 = vmatpush.bf16.msra.mxu2 %v1847_v57  ;;  %v1879_v57 = vld [vmem:[%s2139_s5] ss:$0 sm:$0xff]  ;;  %s2048_s5 = smov [#allocation10]  }
  0x6f   :  { %1160 = vmatpush.bf16.msra.mxu3 %v1822_v54  ;;  %s1289_s22 = sshll.u32 %s2048_s5, 4  ;;  %s1290_s22 = int_to_ptr.vmem [resolvable:$true] %s1289_s22 }
  0x70   :  { %1185 = vmatpush.bf16.msra.mxu1 %v1839_v58 }
  0x71   :  { %1173 = vmatpush.bf16.msra.mxu0 %v1830_v59 }
  0x72   :  { %1161 = vmatmul.bf16.vlgmr.msra.gmra.mxu3 %v143_v60  ;;  %1199 = vmatpush.bf16.msra.mxu2 %v1846_v0 }
  0x73   :  { %1205 = vmatpush.bf16.msrb.mxu3 %v1861_v56 }
  0x74   :  { %1174 = vmatmul.bf16.vlgmr.msra.gmra.mxu0 %v144_v2  ;;  %1186 = vmatpush.bf16.msra.mxu1 %v1838_v3 }
  0x75   :  { %1218 = vmatpush.bf16.msrb.mxu0 %v1869_v62  ;;  %1200 = vmatmul.bf16.vlgmr.msra.gmra.mxu2 %v146_v6 }
  0x77   :  { %1206 = vmatpush.bf16.msrb.mxu3 %v1860_v63  ;;  %1187 = vmatmul.bf16.vlgmr.msra.gmra.mxu1 %v145_v8 }
  0x79   :  { %1219 = vmatpush.bf16.msrb.mxu0 %v1868_v5 }
  0x7b   :  { %1207 = vmatpush.bf16.msrb.mxu3 %v1859_v7 }
  0x7d   :  { %1220 = vmatpush.bf16.msrb.mxu0 %v1867_v9 }
  0x7f   :  { %1208 = vmatpush.bf16.msrb.mxu3 %v1858_v10 }
  0x81   :  { %1221 = vmatpush.bf16.msrb.mxu0 %v1866_v11 }
  0x83   :  { %1209 = vmatpush.bf16.msrb.mxu3 %v1857_v12 }
  0x85   :  { %1222 = vmatpush.bf16.msrb.mxu0 %v1865_v13 }
  0x87   :  { %1210 = vmatpush.bf16.msrb.mxu3 %v1856_v14 }
  0x89   :  { %1223 = vmatpush.bf16.msrb.mxu0 %v1864_v15 }
  0x8b   :  { %1211 = vmatpush.bf16.msrb.mxu3 %v1855_v16 }
  0x8d   :  { %1224 = vmatpush.bf16.msrb.mxu0 %v1863_v17 }
  0x8f   :  { %1212 = vmatpush.bf16.msrb.mxu3 %v1854_v18 }
  0x91   :  { %1225 = vmatpush.bf16.msrb.mxu0 %v1862_v21 }
  0x92   :  { %1213 = vmatmul.bf16.vlgmr.msrb.gmra.mxu3 %v147_v20 }
  0x94   :  { %1226 = vmatmul.bf16.vlgmr.msrb.gmra.mxu0 %v148_v23 }
  0xb1   :  { %v670_v24 = vpop.f32.mrf.mxu0 }
  0xb2   :  { %v671_v31 = vadd.f32 %v1878_v29, %v670_v24 }
  0xb4   :  { %v683_v25 = vpop.f32.mrf.mxu1 }
  0xb5   :  { %v684_v34 = vadd.f32 %v683_v25, %v671_v31 }
  0xb8   :  { %v696_v26 = vpop.f32.mrf.mxu2 }
  0xb9   :  { %v709_v27 = vpop.f32.mrf.mxu3  ;;  %v672_v28 = vpop.f32.mrf.mxu0  ;;  %v697_v35 = vadd.f32 %v696_v26, %v684_v34 }
  0xbb   :  { %v710_v36 = vadd.f32 %v709_v27, %v697_v35 }
  0xbc   :  { %v685_v30 = vpop.f32.mrf.mxu1 }
  0xc0   :  { %v698_v32 = vpop.f32.mrf.mxu2 }
  0xc1   :  { %v711_v33 = vpop.f32.mrf.mxu3 }
  0xd1   :  { %v722_v37 = vpop.f32.mrf.mxu0 }
  0xd2   :  { %v723_v38 = vadd.f32 %v722_v37, %v710_v36 }
  0xd4   :  { %v735_v39 = vpop.f32.mrf.mxu1 }
  0xd5   :  { %v761_v40 = vpop.f32.mrf.mxu3  ;;  %v736_v41 = vadd.f32 %v735_v39, %v723_v38 }
  0xd8   :  { %v748_v42 = vpop.f32.mrf.mxu2 }
  0xd9   :  { %v749_v43 = vadd.f32 %v748_v42, %v736_v41  ;;  %v724_v44 = vpop.f32.mrf.mxu0 }
  0xdb   :  { %v762_v45 = vadd.f32 %v761_v40, %v749_v43 }
  0xdc   :  { %v737_v47 = vpop.f32.mrf.mxu1 }
  0xdd   :  { %v763_v46 = vpop.f32.mrf.mxu3  ;;  %v1232_v48 = vsel %vm1231_vm2, %v762_v45, -inf }
  0xde   :  { %1233 = vmax.xlane.f32.xlu0 %v1232_v48 }
  0xe0   :  { %v750_v49 = vpop.f32.mrf.mxu2 }
  0xf1   :  { %v1175_v50 = vpop.f32.mrf.mxu0 }
  0xf4   :  { %v1188_v52 = vpop.f32.mrf.mxu1 }
  0xf5   :  { %v1162_v51 = vpop.f32.mrf.mxu3 }
  0xf6   :  { %v1163_v59 = vadd.f32 %v1879_v57, %v1162_v51 }
  0xf8   :  { %v1201_v54 = vpop.f32.mrf.mxu2  ;;  %v1176_v60 = vadd.f32 %v1175_v50, %v1163_v59 }
  0xf9   :  { %v1177_v53 = vpop.f32.mrf.mxu0 }
  0xfa   :  { %v1189_v61 = vadd.f32 %v1188_v52, %v1176_v60 }
  0xfc   :  { %v1190_v56 = vpop.f32.mrf.mxu1  ;;  %v1202_v63 = vadd.f32 %v1201_v54, %v1189_v61 }
  0xfd   :  { %v1164_v55 = vpop.f32.mrf.mxu3 }
 0x100   :  { %v1203_v58 = vpop.f32.mrf.mxu2 }
 0x111   :  { %v1227_v62 = vpop.f32.mrf.mxu0 }
 0x115   :  { %v1214_v0 = vpop.f32.mrf.mxu3 }
 0x116   :  { %v1215_v1 = vadd.f32 %v1214_v0, %v1202_v63 }
 0x118   :  { %v1228_v2 = vadd.f32 %v1227_v62, %v1215_v1 }
 0x119   :  { %v1229_v3 = vpop.f32.mrf.mxu0 }
 0x11a   :  { %v1236_v4 = vsel %vm1231_vm2, %v1228_v2, -inf }
 0x11b   :  { %1237 = vmax.xlane.f32.xlu0 %v1236_v4 }
 0x11d   :  { %v1216_v5 = vpop.f32.mrf.mxu3 }
 0x151   :  { %v1234_v6 = vpop.xlane.xlu0 %1233 }
 0x152   :  { %v1235_v7 = vsub.f32 %v762_v45, %v1234_v6 }
 0x154   :  { %v1240_v8 = vmul.f32 1.442695, %v1235_v7 }
 0x156   :  { %1880 = vpow2.f32 %v1240_v8 }
 0x15c   :  { %v1881_v9 = vpop.eup %1880 }
 0x15d   :  { %v1244_v10 = vsel %vm1231_vm2, %v1881_v9, 0.0 }
 0x15e   :  { %1245 = vadd.xlane.f32.xlu1 %v1244_v10 }
 0x18e   :  { %v1238_v11 = vpop.xlane.xlu0 %1237 }
 0x18f   :  { %v1239_v12 = vsub.f32 %v1228_v2, %v1238_v11 }
 0x191   :  { %v1242_v13 = vmul.f32 1.442695, %v1239_v12 }
 0x193   :  { %1882 = vpow2.f32 %v1242_v13 }
 0x199   :  { %v1883_v14 = vpop.eup %1882 }
 0x19a   :  { %v1262_v15 = vsel %vm1231_vm2, %v1883_v14, 0.0 }
 0x19b   :  { %1263 = vadd.xlane.f32.xlu1 %v1262_v15 }
 0x1d1   :  { %v1246_v16 = vpop.xlane.xlu1 %1245 }
 0x1d2   :  { %1884 = vrcp.f32 %v1246_v16  ;;  %v1258_v20 = vand.u32 2147483648, %v1246_v16  ;;  %v1256_v22 = vand.u32 2147483647, %v1246_v16  ;;  %vm1252_vm4 = vweird.f32 %v1246_v16 }
 0x1d4   :  { %v1259_v24 = vor.u32 1.1754944e-38, %v1258_v20  ;;  %vm1257_vm6 = vcmp.eq.f32.partialorder %v1256_v22, 8.507059e+37 }
 0x1d8   :  { %v1885_v17 = vpop.eup %1884 }
 0x1d9   :  { %v1248_v18 = vmul.f32 %v1885_v17, %v1246_v16  ;;  %vm1253_vm3 = vweird.f32 %v1885_v17 }
 0x1da   :  { %vm1254_vm5 = vmor %vm1252_vm4, %vm1253_vm3 }
 0x1db   :  { %v1249_v19 = vsub.f32 1.0, %v1248_v18 }
 0x1dd   :  { %v1250_v21 = vmul.f32 %v1885_v17, %v1249_v19 }
 0x1df   :  { %v1251_v23 = vadd.f32 %v1885_v17, %v1250_v21 }
 0x1e1   :  { %v1255_v25 = vsel %vm1254_vm5, %v1885_v17, %v1251_v23 }
 0x1e2   :  { %v1260_v26 = vsel %vm1257_vm6, %v1259_v24, %v1255_v25 }
 0x1e3   :  { %v1261_v27 = vmul.f32 %v1881_v9, %v1260_v26 }
 0x1e5   :  { %v1280_v28 = vpack.c.bf16 %v1261_v27, %v1261_v27 }
 0x1e7   :  { %1281 = vst [vmem:[#allocation10] sm:$0x1] %v1280_v28 }
 0x1e8   :  { %1294 = dma.vmem_to_hbm [thread:$0]  %s1290_s22, 16, %s1292_s25, [#allocation4]  }
 0x20e   :  { %v1264_v29 = vpop.xlane.xlu1 %1263 }
 0x20f   :  { %1886 = vrcp.f32 %v1264_v29  ;;  %v1276_v33 = vand.u32 2147483648, %v1264_v29  ;;  %v1274_v35 = vand.u32 2147483647, %v1264_v29  ;;  %vm1270_vm8 = vweird.f32 %v1264_v29 }
 0x211   :  { %v1277_v37 = vor.u32 1.1754944e-38, %v1276_v33  ;;  %vm1275_vm10 = vcmp.eq.f32.partialorder %v1274_v35, 8.507059e+37 }
 0x215   :  { %v1887_v30 = vpop.eup %1886 }
 0x216   :  { %v1266_v31 = vmul.f32 %v1887_v30, %v1264_v29  ;;  %vm1271_vm7 = vweird.f32 %v1887_v30 }
 0x217   :  { %vm1272_vm9 = vmor %vm1270_vm8, %vm1271_vm7 }
 0x218   :  { %v1267_v32 = vsub.f32 1.0, %v1266_v31 }
 0x21a   :  { %v1268_v34 = vmul.f32 %v1887_v30, %v1267_v32 }
 0x21c   :  { %v1269_v36 = vadd.f32 %v1887_v30, %v1268_v34 }
 0x21e   :  { %v1273_v38 = vsel %vm1272_vm9, %v1887_v30, %v1269_v36 }
 0x21f   :  { %v1278_v39 = vsel %vm1275_vm10, %v1277_v37, %v1273_v38 }
 0x220   :  { %v1279_v40 = vmul.f32 %v1883_v14, %v1278_v39 }
 0x222   :  { %v1282_v41 = vpack.c.bf16 %v1279_v40, %v1279_v40 }
 0x224   :  { %1283 = vst [vmem:[#allocation11] sm:$0x1] %v1282_v41 }
 0x225   :  { %1305 = dma.vmem_to_hbm [thread:$0]  %s1301_s26, 16, %s1303_s29, [#allocation12]  }
 0x226   :  { %2038 = dma.done.wait [#allocation4], 16  }
 0x227   :  { %2039 = vsyncadd [#allocation4], 4294967280 }
 0x228   :  { %2040 = dma.done.wait [#allocation12], 16  }
 0x229   :  { %2041 = vsyncadd [#allocation12], 4294967280 }
 0x22a   :  { %1314 = vsyncpa [#allocation3], 1 }
 0x22b   :  { %1315 = vsyncpa [#allocation6], 1 }
 0x22c   :  { %1316 = vsyncpa [#allocation9], 1 }
 0x22d   :  { %1317 = vsyncpa [#allocation4], 1 }
 0x22e   :  { %1318 = vsyncpa [#allocation12], 1 }

</bundles_post_ra>
